<compile_context>
chip_gen: v7x
topology: tpu7x:2x2x1
jax: 0.10.0
libtpu: 0.0.40
codegen_flags: <defaults>
</compile_context>

<pallas_src>
import functools

import jax
import jax.numpy as jnp
from jax.experimental import pallas as pl
from jax.experimental.pallas import tpu as pltpu


def _round_up(n, m):
    return ((n + m - 1) // m) * m


def _cdiv(a, b):
    return -(-a // b)


# ---------------------------------------------------------------------------
# Kernel: fused Linear -> ReLU -> (dropout=id) -> Linear -> ReLU ->
# (dropout=id) -> Linear on a (tm, Ep) row tile; all padded weights resident
# in VMEM; every matmul accumulates in f32 regardless of operand dtype.
# ---------------------------------------------------------------------------
def _mlp_kernel(x_ref, w1_ref, b1_ref, w2_ref, b2_ref, w3_ref, b3_ref, o_ref):
    h1 = jnp.dot(x_ref[...], w1_ref[...], preferred_element_type=jnp.float32)
    h1 = jnp.maximum(h1 + b1_ref[...], 0.0)          # ReLU (dropout = identity)

    h2 = jnp.dot(h1.astype(w2_ref.dtype), w2_ref[...],
                 preferred_element_type=jnp.float32)
    h2 = jnp.maximum(h2 + b2_ref[...], 0.0)          # ReLU (dropout = identity)

    out = jnp.dot(h2.astype(w3_ref.dtype), w3_ref[...],
                  preferred_element_type=jnp.float32) + b3_ref[...]
    o_ref[...] = out.astype(o_ref.dtype)


# ---------------------------------------------------------------------------
# One-time parameter preparation (pad to lane-dense dims, cast to compute
# dtype).  Zero padding is exact: padded bias = 0 so padded hidden columns
# stay 0 through ReLU, and padded weight rows contribute 0 downstream.
# ---------------------------------------------------------------------------
def prepare_params(params, *, compute_dtype=jnp.bfloat16, lane_multiple=128):
    # lane_multiple=256 can better fill the 256x256 MXU on v6e/v7x when the
    # feature dims are tiny; 128 is always correct and optimal for v5e.
    w1, b1, w2, b2, w3, b3 = params
    E, H = w1.shape
    O = w3.shape[1]
    Ep = _round_up(E, lane_multiple)
    Hp = _round_up(H, lane_multiple)
    Op = _round_up(O, lane_multiple)

    cd = compute_dtype
    w1p = jnp.pad(w1.astype(cd), ((0, Ep - E), (0, Hp - H)))
    w2p = jnp.pad(w2.astype(cd), ((0, Hp - H), (0, Hp - H)))
    w3p = jnp.pad(w3.astype(cd), ((0, Hp - H), (0, Op - O)))
    b1p = jnp.pad(b1.astype(jnp.float32), (0, Hp - H)).reshape(1, Hp)
    b2p = jnp.pad(b2.astype(jnp.float32), (0, Hp - H)).reshape(1, Hp)
    b3p = jnp.pad(b3.astype(jnp.float32), (0, Op - O)).reshape(1, Op)
    padded = (w1p, b1p, w2p, b2p, w3p, b3p)
    return padded, (E, H, O)


def _vmem_capacity_bytes():
    try:
        cap = getattr(pltpu.get_tpu_info(), "vmem_capacity_bytes", None)
        if cap:
            return int(cap)
    except Exception:
        pass
    return 64 << 20   # conservative fallback valid on every generation (v7x)


def _choose_row_tiling(M, tm):
    tm = max(8, int(tm))
    steps = max(1, _cdiv(M, tm))
    if steps == 1 and M >= 16:
        steps = 2            # give v7x's two TensorCores work to split
    tm_eff = _round_up(max(_cdiv(M, steps), 1), 8)
    steps = _cdiv(M, tm_eff)
    return tm_eff, steps


@functools.partial(jax.jit, static_argnames=("O", "tm", "out_dtype"))
def _dense_layer_call(x2d, padded, *, O, tm, out_dtype):
    w1p, b1p, w2p, b2p, w3p, b3p = padded
    Ep, Hp = w1p.shape
    Op = w3p.shape[1]
    M, E = x2d.shape
    cdt = w1p.dtype
    c_item = jnp.dtype(cdt).itemsize
    out_item = jnp.dtype(out_dtype).itemsize

    # Resident (single-buffered) weights + f32 biases.
    weight_bytes = (w1p.size + w2p.size + w3p.size) * c_item \
        + (b1p.size + b2p.size + b3p.size) * 4

    tm_eff, steps = _choose_row_tiling(M, tm)

    # Per-generation VMEM budget with headroom for compiler scratch/semaphores:
    # ~54 MiB on v7x (64 MiB physical), ~108 MiB on v5e/v6e (128 MiB physical).
    budget = int(_vmem_capacity_bytes() * 0.85)

    def needed(t):
        tiles = 2 * t * Ep * c_item + 2 * t * Op * out_item        # x / out (double-buffered)
        interm = 2 * t * Hp * 4 + 2 * t * Hp * c_item              # h1/h2 f32 + cast copies
        return weight_bytes + tiles + interm

    while needed(tm_eff) > budget and tm_eff > 8:
        tm_eff = max(8, _round_up(tm_eff // 2, 8))
        steps = _cdiv(M, tm_eff)
    if needed(8) > budget:
        # TODO(synk): stream w2/w3 in column tiles over a second ("arbitrary")
        # grid axis when resident weights alone exceed the VMEM budget.
        raise ValueError("hidden size too large for the resident-weight kernel")

    Mp = steps * tm_eff   # small pad: Mp - M < tm_eff (never a full default tile)
    xp = jnp.pad(x2d.astype(cdt), ((0, Mp - M), (0, Ep - E)))

    vmem_limit = int(max(min(needed(tm_eff) + (8 << 20), budget), 32 << 20))
    flops = 2 * Mp * (Ep * Hp + Hp * Hp + Hp * Op)
    bytes_accessed = int(xp.size * c_item + weight_bytes + Mp * Op * out_item)

    def resident(shape):
        # Constant index_map -> no need for a second pipeline buffer.
        return pl.BlockSpec(shape, lambda i: (0, 0),
                            pipeline_mode=pl.Buffered(buffer_count=1))

    out2d = pl.pallas_call(
        _mlp_kernel,
        out_shape=jax.ShapeDtypeStruct((Mp, Op), out_dtype),
        grid_spec=pltpu.PrefetchScalarGridSpec(
            num_scalar_prefetch=0,
            grid=(steps,),
            in_specs=[
                pl.BlockSpec((tm_eff, Ep), lambda i: (i, 0)),  # x rows (double-buffered)
                resident((Ep, Hp)),                            # w1
                resident((1, Hp)),                             # b1
                resident((Hp, Hp)),                            # w2
                resident((1, Hp)),                             # b2
                resident((Hp, Op)),                            # w3
                resident((1, Op)),                             # b3
            ],
            out_specs=pl.BlockSpec((tm_eff, Op), lambda i: (i, 0)),
        ),
        compiler_params=pltpu.CompilerParams(
            dimension_semantics=("parallel",),
            vmem_limit_bytes=vmem_limit,
        ),
        cost_estimate=pl.CostEstimate(
            flops=flops, transcendentals=0, bytes_accessed=bytes_accessed),
    )(xp, w1p, b1p, w2p, b2p, w3p, b3p)

    return out2d[:M, :O]


def dense_layer_pallas(x, prepared, *, tm=512):
    """x: (..., embeds_dim); prepared = prepare_params(params). Returns (..., num_outputs)."""
    padded, (E, _H, O) = prepared
    assert x.shape[-1] == E, (x.shape, E)
    lead_shape = x.shape[:-1]
    x2d = x.reshape(-1, E)
    out2d = _dense_layer_call(x2d, padded, O=O, tm=tm, out_dtype=x.dtype)
    return out2d.reshape(*lead_shape, O)


# ---------------------------------------------------------------------------
# Reference + init helpers (nn.Linear-style init).
# ---------------------------------------------------------------------------
def init_params(key, embeds_dim, hidden_size, num_outputs=1, dtype=jnp.float32):
    ks = jax.random.split(key, 6)

    def linear(kw, kb, fan_in, fan_out):
        bound = 1.0 / jnp.sqrt(fan_in)
        w = jax.random.uniform(kw, (fan_in, fan_out), dtype, -bound, bound)
        b = jax.random.uniform(kb, (fan_out,), dtype, -bound, bound)
        return w, b

    w1, b1 = linear(ks[0], ks[1], embeds_dim, hidden_size)
    w2, b2 = linear(ks[2], ks[3], hidden_size, hidden_size)
    w3, b3 = linear(ks[4], ks[5], hidden_size, num_outputs)
    return (w1, b1, w2, b2, w3, b3)


def dense_layer_ref(x, params):
    w1, b1, w2, b2, w3, b3 = params
    h1 = jnp.maximum(x @ w1 + b1, 0.0)
    h2 = jnp.maximum(h1 @ w2 + b2, 0.0)
    return h2 @ w3 + b3


if __name__ == "__main__":
    key = jax.random.PRNGKey(0)
    k_x, k_p = jax.random.split(key)

    batch, seq = 2, 8
    embeds_dim, hidden_size, num_outputs = 32, 32, 1

    x = jax.random.normal(k_x, (batch, seq, embeds_dim), dtype=jnp.float32)
    params = init_params(k_p, embeds_dim, hidden_size, num_outputs)
    ref = dense_layer_ref(x, params)

    # Default path: bf16 operands (MXU-native on v5e/v6e/v7x), f32 accumulation.
    prepared_bf16 = prepare_params(params)
    out_bf16 = jax.block_until_ready(dense_layer_pallas(x, prepared_bf16, tm=512))
    assert out_bf16.shape == (batch, seq, num_outputs), out_bf16.shape
    assert jnp.allclose(out_bf16, ref, atol=5e-2, rtol=5e-2), "bf16 mismatch vs reference"

    # Exactness check with f32 operands.
    prepared_f32 = prepare_params(params, compute_dtype=jnp.float32)
    out_f32 = jax.block_until_ready(dense_layer_pallas(x, prepared_f32, tm=512))
    assert jnp.allclose(out_f32, ref, atol=1e-5, rtol=1e-5), "f32 mismatch vs reference"

    print("KERNEL_OK")
</pallas_src>

<mosaic_0001>
module attributes {stable_mosaic.version = 11 : i64} {
  func.func @_mlp_kernel(%arg0: i32, %arg1: memref<8x128xbf16, #tpu.memory_space<vmem>>, %arg2: memref<128x128xbf16, #tpu.memory_space<vmem>>, %arg3: memref<1x128xf32, #tpu.memory_space<vmem>>, %arg4: memref<128x128xbf16, #tpu.memory_space<vmem>>, %arg5: memref<1x128xf32, #tpu.memory_space<vmem>>, %arg6: memref<128x128xbf16, #tpu.memory_space<vmem>>, %arg7: memref<1x128xf32, #tpu.memory_space<vmem>>, %arg8: memref<8x128xf32, #tpu.memory_space<vmem>>) attributes {dimension_semantics = [#tpu.dimension_semantics<parallel>], iteration_bounds = array<i64: 2>, scalar_prefetch = 0 : i64, scratch_operands = 0 : i64, tpu.core_type = #tpu.core_type<tc>, window_params = [{transform_indices = @transform_0, window_bounds = array<i64: 8, 128>}, {pipeline_mode = #tpu.pipeline_mode<synchronous>, transform_indices = @transform_1, window_bounds = array<i64: 128, 128>}, {pipeline_mode = #tpu.pipeline_mode<synchronous>, transform_indices = @transform_2, window_bounds = array<i64: 1, 128>}, {pipeline_mode = #tpu.pipeline_mode<synchronous>, transform_indices = @transform_3, window_bounds = array<i64: 128, 128>}, {pipeline_mode = #tpu.pipeline_mode<synchronous>, transform_indices = @transform_4, window_bounds = array<i64: 1, 128>}, {pipeline_mode = #tpu.pipeline_mode<synchronous>, transform_indices = @transform_5, window_bounds = array<i64: 128, 128>}, {pipeline_mode = #tpu.pipeline_mode<synchronous>, transform_indices = @transform_6, window_bounds = array<i64: 1, 128>}, {transform_indices = @transform_7, window_bounds = array<i64: 8, 128>}]} {
    %c0 = arith.constant 0 : index
    %c0_0 = arith.constant 0 : index
    %0 = vector.load %arg1[%c0, %c0_0] : memref<8x128xbf16, #tpu.memory_space<vmem>>, vector<8x128xbf16>
    %c0_1 = arith.constant 0 : index
    %c0_2 = arith.constant 0 : index
    %1 = vector.load %arg2[%c0_1, %c0_2] : memref<128x128xbf16, #tpu.memory_space<vmem>>, vector<128x128xbf16>
    %cst = arith.constant dense<0.000000e+00> : vector<8x128xf32>
    %2 = tpu.matmul %0, %1, %cst {dimension_numbers = #tpu.dot_dimension_numbers<[1], [0], [0], [1], [0, 0, 1, 1], [], []>} : vector<8x128xbf16>, vector<128x128xbf16>, vector<8x128xf32> -> vector<8x128xf32>
    %c0_3 = arith.constant 0 : index
    %c0_4 = arith.constant 0 : index
    %3 = vector.load %arg3[%c0_3, %c0_4] : memref<1x128xf32, #tpu.memory_space<vmem>>, vector<1x128xf32>
    %4 = vector.broadcast %3 : vector<1x128xf32> to vector<8x128xf32>
    %5 = arith.addf %2, %4 : vector<8x128xf32>
    %cst_5 = arith.constant 0.000000e+00 : f32
    %6 = vector.broadcast %cst_5 : f32 to vector<8x128xf32>
    %7 = arith.maximumf %5, %6 : vector<8x128xf32>
    %8 = arith.truncf %7 : vector<8x128xf32> to vector<8x128xbf16>
    %c0_6 = arith.constant 0 : index
    %c0_7 = arith.constant 0 : index
    %9 = vector.load %arg4[%c0_6, %c0_7] : memref<128x128xbf16, #tpu.memory_space<vmem>>, vector<128x128xbf16>
    %cst_8 = arith.constant dense<0.000000e+00> : vector<8x128xf32>
    %10 = tpu.matmul %8, %9, %cst_8 {dimension_numbers = #tpu.dot_dimension_numbers<[1], [0], [0], [1], [0, 0, 1, 1], [], []>} : vector<8x128xbf16>, vector<128x128xbf16>, vector<8x128xf32> -> vector<8x128xf32>
    %c0_9 = arith.constant 0 : index
    %c0_10 = arith.constant 0 : index
    %11 = vector.load %arg5[%c0_9, %c0_10] : memref<1x128xf32, #tpu.memory_space<vmem>>, vector<1x128xf32>
    %12 = vector.broadcast %11 : vector<1x128xf32> to vector<8x128xf32>
    %13 = arith.addf %10, %12 : vector<8x128xf32>
    %cst_11 = arith.constant 0.000000e+00 : f32
    %14 = vector.broadcast %cst_11 : f32 to vector<8x128xf32>
    %15 = arith.maximumf %13, %14 : vector<8x128xf32>
    %16 = arith.truncf %15 : vector<8x128xf32> to vector<8x128xbf16>
    %c0_12 = arith.constant 0 : index
    %c0_13 = arith.constant 0 : index
    %17 = vector.load %arg6[%c0_12, %c0_13] : memref<128x128xbf16, #tpu.memory_space<vmem>>, vector<128x128xbf16>
    %cst_14 = arith.constant dense<0.000000e+00> : vector<8x128xf32>
    %18 = tpu.matmul %16, %17, %cst_14 {dimension_numbers = #tpu.dot_dimension_numbers<[1], [0], [0], [1], [0, 0, 1, 1], [], []>} : vector<8x128xbf16>, vector<128x128xbf16>, vector<8x128xf32> -> vector<8x128xf32>
    %c0_15 = arith.constant 0 : index
    %c0_16 = arith.constant 0 : index
    %19 = vector.load %arg7[%c0_15, %c0_16] : memref<1x128xf32, #tpu.memory_space<vmem>>, vector<1x128xf32>
    %20 = vector.broadcast %19 : vector<1x128xf32> to vector<8x128xf32>
    %21 = arith.addf %18, %20 : vector<8x128xf32>
    %c0_17 = arith.constant 0 : index
    %c0_18 = arith.constant 0 : index
    %22 = vector.load %arg8[%c0_17, %c0_18] : memref<8x128xf32, #tpu.memory_space<vmem>>, vector<8x128xf32>
    tpu.vector_store %arg8[%c0_17, %c0_18], %21 {strides = array<i32>} : memref<8x128xf32, #tpu.memory_space<vmem>>, vector<8x128xf32>,
    return
  }
  func.func @transform_0(%arg0: i32) -> (i32, i32) {
    %c0_i32 = arith.constant 0 : i32
    %c0_i32_0 = arith.constant 0 : i32
    return %arg0, %c0_i32 : i32, i32
  }
  func.func @transform_1(%arg0: i32) -> (i32, i32) {
    %c0_i32 = arith.constant 0 : i32
    %c0_i32_0 = arith.constant 0 : i32
    %c0_i32_1 = arith.constant 0 : i32
    return %c0_i32, %c0_i32_0 : i32, i32
  }
  func.func @transform_2(%arg0: i32) -> (i32, i32) {
    %c0_i32 = arith.constant 0 : i32
    %c0_i32_0 = arith.constant 0 : i32
    %c0_i32_1 = arith.constant 0 : i32
    return %c0_i32, %c0_i32_0 : i32, i32
  }
  func.func @transform_3(%arg0: i32) -> (i32, i32) {
    %c0_i32 = arith.constant 0 : i32
    %c0_i32_0 = arith.constant 0 : i32
    %c0_i32_1 = arith.constant 0 : i32
    return %c0_i32, %c0_i32_0 : i32, i32
  }
  func.func @transform_4(%arg0: i32) -> (i32, i32) {
    %c0_i32 = arith.constant 0 : i32
    %c0_i32_0 = arith.constant 0 : i32
    %c0_i32_1 = arith.constant 0 : i32
    return %c0_i32, %c0_i32_0 : i32, i32
  }
  func.func @transform_5(%arg0: i32) -> (i32, i32) {
    %c0_i32 = arith.constant 0 : i32
    %c0_i32_0 = arith.constant 0 : i32
    %c0_i32_1 = arith.constant 0 : i32
    return %c0_i32, %c0_i32_0 : i32, i32
  }
  func.func @transform_6(%arg0: i32) -> (i32, i32) {
    %c0_i32 = arith.constant 0 : i32
    %c0_i32_0 = arith.constant 0 : i32
    %c0_i32_1 = arith.constant 0 : i32
    return %c0_i32, %c0_i32_0 : i32, i32
  }
  func.func @transform_7(%arg0: i32) -> (i32, i32) {
    %c0_i32 = arith.constant 0 : i32
    %c0_i32_0 = arith.constant 0 : i32
    return %arg0, %c0_i32 : i32, i32
  }
}

</mosaic_0001>

<bundles_post_ra>
// kernel: _dense_layer_call.1
= control target key start
LH: loop header
LB: loop body
LE: loop exit
PB: predicated region body
PF: predicated region fallthrough
CT: control target
= control target key end

     0   :  { %12 = vsyncpa [#allocation3], 0  ;;  %s1255_s0 = inlined_call_operand.vmem [shape: bf16[16,128], index: 0, kind: input, shape index: {}]   ;;  %s1256_s1 = inlined_call_operand.hbm [shape: bf16[128,128], index: 1, kind: input, shape index: {}]   ;;  %s1257_s2 = inlined_call_operand.vmem [shape: f32[1,128], index: 2, kind: input, shape index: {}]   ;;  %s1258_s3 = inlined_call_operand.hbm [shape: bf16[128,128], index: 3, kind: input, shape index: {}]   ;;  %s1259_s4 = inlined_call_operand.vmem [shape: f32[1,128], index: 4, kind: input, shape index: {}]   ;;  %s1260_s5 = inlined_call_operand.hbm [shape: bf16[128,128], index: 5, kind: input, shape index: {}]   ;;  %s1261_s6 = inlined_call_operand.vmem [shape: f32[1,128], index: 6, kind: input, shape index: {}]   ;;  %s1262_s7 = inlined_call_operand.vmem [shape: f32[16,128], index: 7, kind: output, shape index: {}]  }
   0x1   :  { %13 = vsyncpa [#allocation5], 0  ;;  %s1085_s24 = smov 0  }
   0x2 LB: > { %s1091_s25 = sadd.s32 4294967295, %s1036_s24   ;;  %p744_p0 = scmp.ge.s32.totalorder %s1036_s24, 1  ;;  %s1036_s24 = sphi %s1085_s24, %s19_s24  }
   0x3   : > { %p202_p1 = scmp.lt.s32.totalorder %s1036_s24, 3  ;;  %p1263_p2 = scmp.eq.s32.totalorder %s1091_s25, 0 }
   0x4   : > { %s1038_s27 = smov [#allocation4]   ;;  %s1039_s29 = smov [#allocation2]  }
   0x5   : > { %p1096_p3 = pnand %p744_p0, %p202_p1  ;;  %s230_s28 = sshll.u32 %s1038_s27, 4  ;;  %s231_s28 = int_to_ptr.vmem [resolvable:$true] %s230_s28 }
   0x6   : > { %s214_s30 = sshll.u32 %s1039_s29, 4  ;;  %s1040_s9 = smov [#allocation6]   ;;  %s1108_s30 = int_to_ptr.vmem [resolvable:$true] %s214_s30 }
   0x7   : > { %s1265_s26 = scalar_select %p1096_p3, 1, 0 }
   0x8   : > { %p883_p4 = pneg %p1096_p3  ;;  %s246_s10 = sshll.u32 %s1040_s9, 4  ;;  %s1110_s10 = int_to_ptr.vmem [resolvable:$true] %s246_s10 }
   0x9   : > { %s938_s13 = scalar_lea.hbm %s1258_s3, 1024 }
   0xa   : > { %p1104_p5 = pnand %p1263_p2, %p883_p4  ;;  %p939_p6 = scmp.ne.s32.totalorder %s1258_s3, %s938_s13 }
   0xb   : > { %p945_p10 = scmp.lt.u32.totalorder %s938_s13, %s1258_s3 }
   0xc   : > { %p1120_p7 = pneg %p1104_p5 }
   0xe   : > { %p941_p8 = pnand %p1120_p7, %p939_p6 }
  0x10   : > { %p942_p9 = pneg %p941_p8 }
  0x12   : > { %p947_p11 = pnand %p945_p10, %p942_p9 }
  0x14   : > { %950 = shalt.err (!%p947_p11)
}
  0x15   : > { %s951_s19 = scalar_lea.vmem %s231_s28, 1024  ;;  %p959_p1 = scmp.lt.s32.totalorder %s231_s28, %s231_s28 }
  0x16   : > { %p952_p12 = scmp.ne.s32.totalorder %s231_s28, %s951_s19  ;;  %p960_p4 = scmp.lt.s32.totalorder %s951_s19, %s951_s19 }
  0x18   : > { %p954_p13 = pnand %p952_p12, %p1120_p7  ;;  %p961_p2 = por %p960_p4, %p959_p1 }
  0x1a   : > { %p955_p0 = pneg %p954_p13 }
  0x1c   : > { %p962_p3 = pnand %p961_p2, %p955_p0 }
  0x1e   : > { %965 = shalt.err (!%p962_p3)
}
  0x1f   : > { %s1041_s20 = smov 64   ;;  %s1042_s21 = smov 4  }
  0x20   : > { %889 = dma.hbm_to_vmem [thread:$0]  (!%p1104_p5), %s1258_s3, 1024, %s231_s28, [#allocation5], %s1041_s20, %s1041_s20, %s1042_s21  }
  0x21   : > { %s966_s9 = scalar_lea.hbm %s1256_s1, 1024 }
  0x22   : > { %p967_p2 = scmp.ne.s32.totalorder %s1256_s1, %s966_s9  ;;  %p973_p8 = scmp.lt.u32.totalorder %s966_s9, %s1256_s1 }
  0x24   : > { %p969_p3 = pnand %p967_p2, %p1120_p7 }
  0x26   : > { %p970_p6 = pneg %p969_p3 }
  0x28   : > { %p975_p9 = pnand %p973_p8, %p970_p6 }
  0x2a   : > { %978 = shalt.err (!%p975_p9)
}
  0x2b   : > { %s979_s28 = scalar_lea.vmem %s1108_s30, 1024  ;;  %p987_p13 = scmp.lt.s32.totalorder %s1108_s30, %s1108_s30 }
  0x2c   : > { %p980_p10 = scmp.ne.s32.totalorder %s1108_s30, %s979_s28  ;;  %p988_p0 = scmp.lt.s32.totalorder %s979_s28, %s979_s28 }
  0x2e   : > { %p982_p11 = pnand %p980_p10, %p1120_p7  ;;  %p989_p1 = por %p988_p0, %p987_p13 }
  0x30   : > { %p983_p12 = pneg %p982_p11 }
  0x32   : > { %p990_p4 = pnand %p989_p1, %p983_p12 }
  0x34   : > { %993 = shalt.err (!%p990_p4)
}
  0x35   : > { %886 = dma.hbm_to_vmem [thread:$0]  (!%p1104_p5), %s1256_s1, 1024, %s1108_s30, [#allocation3], %s1041_s20, %s1041_s20, %s1042_s21  }
  0x36   : > { %s994_s22 = scalar_lea.hbm %s1260_s5, 1024 }
  0x37   : > { %p995_p2 = scmp.ne.s32.totalorder %s1260_s5, %s994_s22  ;;  %p1001_p8 = scmp.lt.u32.totalorder %s994_s22, %s1260_s5 }
  0x39   : > { %p997_p3 = pnand %p995_p2, %p1120_p7 }
  0x3b   : > { %p998_p6 = pneg %p997_p3 }
  0x3d   : > { %p1003_p9 = pnand %p1001_p8, %p998_p6 }
  0x3f   : > { %1006 = shalt.err (!%p1003_p9)
}
  0x40   : > { %s1007_s30 = scalar_lea.vmem %s1110_s10, 1024  ;;  %p1015_p13 = scmp.lt.s32.totalorder %s1110_s10, %s1110_s10 }
  0x41   : > { %p1008_p10 = scmp.ne.s32.totalorder %s1110_s10, %s1007_s30  ;;  %p1016_p0 = scmp.lt.s32.totalorder %s1007_s30, %s1007_s30 }
  0x43   : > { %p1010_p11 = pnand %p1008_p10, %p1120_p7  ;;  %p1017_p1 = por %p1016_p0, %p1015_p13 }
  0x45   : > { %p1011_p12 = pneg %p1010_p11 }
  0x47   : > { %p1018_p4 = pnand %p1017_p1, %p1011_p12 }
  0x49   : > { %1021 = shalt.err (!%p1018_p4)
}
  0x4a   : > { %892 = dma.hbm_to_vmem [thread:$0]  (!%p1104_p5), %s1260_s5, 1024, %s1110_s10, [#allocation5], %s1041_s20, %s1041_s20, %s1042_s21  }
  0x4b   : > { %p1268_p2 = scmp.ne.s32.totalorder %s1265_s26, 0 }
  0x4c   : > { %p1269_p7 = scmp.eq.s32.totalorder (!%p1268_p2), %s1091_s25, 0 }
  0x4d   : > { %272 = sbr.rel (%p1268_p2) target bundleno = 774 (0x306), region = 48 }
  0x54   : > { %1027 = dma.done.wait (%p1269_p7), [#allocation3], 1024   ;;  %p1270_p3 = pmov %p1269_p7 }
  0x56   : > { %1029 = vsyncadd (%p1270_p3), [#allocation3], 4294966272  ;;  %p1271_p6 = pmov %p1270_p3 }
  0x57   : > { %p1272_p8 = pmov %p1270_p3 }
  0x58   : > { %1031 = dma.done.wait (%p1271_p6), [#allocation5], 2048  }
  0x59   : > { %1033 = vsyncadd (%p1272_p8), [#allocation5], 4294965248  ;;  %v1043_v0 = vmov 0.0   ;;  %vm1044_vm0 = vmmov 0   ;;  %v914_v1 = vld [vmem:[#allocation2] sm:$0xff]   ;;  %v915_v2 = vld [vmem:[#allocation2 + $0x8] sm:$0xff]  }
  0x5a   : > { %811 = vmatprep.subr.bf16.mxu0 %v1043_v0  ;;  %827 = vmatprep.mubr.msk.bf16.mxu0 %vm1044_vm0, %v1043_v0  ;;  %v916_v3 = vld [vmem:[#allocation2 + $0x10] sm:$0xff]   ;;  %v922_v4 = vld [vmem:[#allocation4] sm:$0xff]   ;;  %v917_v5 = vld [vmem:[#allocation2 + $0x18] sm:$0xff]   ;;  %p310_p5 = scmp.lt.s32.totalorder %s1091_s25, 1 }
  0x5b   : > { %831 = vmatprep.subr.bf16.mxu1 %v1043_v0  ;;  %847 = vmatprep.mubr.msk.bf16.mxu1 %vm1044_vm0, %v1043_v0  ;;  %v923_v6 = vld [vmem:[#allocation4 + $0x8] sm:$0xff]   ;;  %v918_v7 = vld [vmem:[#allocation2 + $0x20] sm:$0xff]   ;;  %v924_v8 = vld [vmem:[#allocation4 + $0x10] sm:$0xff]  }
  0x5c   : > { %812 = vmatpush3.bf16.msra.mxu0 %v914_v1  ;;  %832 = vmatpush3.bf16.msra.mxu1 %v922_v4  ;;  %s1274_s25 = smov (!%p310_p5, %s1091_s25), 1  ;;  %v919_v9 = vld [vmem:[#allocation2 + $0x28] sm:$0xff]   ;;  %v925_v10 = vld [vmem:[#allocation4 + $0x18] sm:$0xff]   ;;  %v920_v11 = vld [vmem:[#allocation2 + $0x30] sm:$0xff]  }
  0x5d   : > { %813 = vmatprep.subr.bf16.mxu0 %v1043_v0  ;;  %833 = vmatprep.subr.bf16.mxu1 %v1043_v0  ;;  %v926_v12 = vld [vmem:[#allocation4 + $0x20] sm:$0xff]   ;;  %s753_s26 = sshll.u32 %s1274_s25, 2  ;;  %v921_v13 = vld [vmem:[#allocation2 + $0x38] sm:$0xff]   ;;  %v927_v14 = vld [vmem:[#allocation4 + $0x28] sm:$0xff]   ;;  %s754_s28 = sshll.u32 %s1274_s25, 3 }
  0x5e   : > { %s313_s16 = scalar_lea.vmem %s1255_s0, %s753_s26  ;;  %v928_v16 = vld [vmem:[#allocation4 + $0x30] sm:$0xff]   ;;  %v929_v17 = vld [vmem:[#allocation4 + $0x38] sm:$0xff]   ;;  %v930_v18 = vld [vmem:[#allocation6] sm:$0xff]   ;;  %s317_s22 = scalar_lea.vmem %s1262_s7, %s754_s28 }
  0x5f   : > { %v319_v15 = vld [vmem:[%s313_s16] sm:$0xf]  ;;  %v931_v19 = vld [vmem:[#allocation6 + $0x8] sm:$0xff]   ;;  %v932_v20 = vld [vmem:[#allocation6 + $0x10] sm:$0xff]  }
  0x60   : > { %814 = vmatpush3.bf16.msra.mxu0 %v915_v2  ;;  %834 = vmatpush3.bf16.msra.mxu1 %v923_v6  ;;  %v933_v21 = vld [vmem:[#allocation6 + $0x18] sm:$0xff]   ;;  %v934_v22 = vld [vmem:[#allocation6 + $0x20] sm:$0xff]   ;;  %v935_v23 = vld [vmem:[#allocation6 + $0x28] sm:$0xff]  }
  0x61   : > { %815 = vmatprep.subr.bf16.mxu0 %v1043_v0  ;;  %835 = vmatprep.subr.bf16.mxu1 %v1043_v0  ;;  %v755_v24 = vld [vmem:[%s1257_s2] ss:$0 sm:$0xff]  ;;  %v936_v32 = vld [vmem:[#allocation6 + $0x30] sm:$0xff]   ;;  %v937_v33 = vld [vmem:[#allocation6 + $0x38] sm:$0xff]  }
  0x62   : > { %v764_v34 = vld [vmem:[%s1259_s4] ss:$0 sm:$0xff] }
  0x63   : > { %v773_v42 = vld [vmem:[%s1261_s6] ss:$0 sm:$0xff] }
  0x64   : > { %816 = vmatpush3.bf16.msra.mxu0 %v916_v3  ;;  %836 = vmatpush3.bf16.msra.mxu1 %v924_v8 }
  0x65   : > { %817 = vmatprep.subr.bf16.mxu0 %v1043_v0  ;;  %837 = vmatprep.subr.bf16.mxu1 %v1043_v0 }
  0x68   : > { %818 = vmatpush3.bf16.msra.mxu0 %v917_v5  ;;  %838 = vmatpush3.bf16.msra.mxu1 %v925_v10 }
  0x69   : > { %819 = vmatprep.subr.bf16.mxu0 %v1043_v0  ;;  %839 = vmatprep.subr.bf16.mxu1 %v1043_v0 }
  0x6c   : > { %820 = vmatpush3.bf16.msra.mxu0 %v918_v7  ;;  %840 = vmatpush3.bf16.msra.mxu1 %v926_v12 }
  0x6d   : > { %821 = vmatprep.subr.bf16.mxu0 %v1043_v0  ;;  %841 = vmatprep.subr.bf16.mxu1 %v1043_v0 }
  0x70   : > { %822 = vmatpush3.bf16.msra.mxu0 %v919_v9  ;;  %842 = vmatpush3.bf16.msra.mxu1 %v927_v14 }
  0x71   : > { %823 = vmatprep.subr.bf16.mxu0 %v1043_v0  ;;  %843 = vmatprep.subr.bf16.mxu1 %v1043_v0 }
  0x74   : > { %824 = vmatpush3.bf16.msra.mxu0 %v920_v11  ;;  %844 = vmatpush3.bf16.msra.mxu1 %v928_v16 }
  0x75   : > { %825 = vmatprep.subr.bf16.mxu0 %v1043_v0  ;;  %845 = vmatprep.subr.bf16.mxu1 %v1043_v0 }
  0x78   : > { %826 = vmatpush3.bf16.msra.mxu0 %v921_v13  ;;  %846 = vmatpush3.bf16.msra.mxu1 %v929_v17 }
  0x79   : > { %851 = vmatprep.subr.bf16.mxu0 %v1043_v0 }
  0x7b   : > { %828 = vmatmul.mubr.bf16.vlgmr.msra.gmra.mrb[0].mxu0 %v319_v15 }
  0x7c   : > { %867 = vmatprep.mubr.msk.bf16.mxu0 %vm1044_vm0, %v1043_v0  ;;  %852 = vmatpush3.bf16.msra.mxu0 %v930_v18 }
  0x7d   : > { %853 = vmatprep.subr.bf16.mxu0 %v1043_v0 }
  0x80   : > { %854 = vmatpush3.bf16.msra.mxu0 %v931_v19 }
  0x81   : > { %855 = vmatprep.subr.bf16.mxu0 %v1043_v0 }
  0x84   : > { %856 = vmatpush3.bf16.msra.mxu0 %v932_v20 }
  0x85   : > { %857 = vmatprep.subr.bf16.mxu0 %v1043_v0 }
  0x88   : > { %858 = vmatpush3.bf16.msra.mxu0 %v933_v21 }
  0x89   : > { %859 = vmatprep.subr.bf16.mxu0 %v1043_v0 }
  0x8c   : > { %860 = vmatpush3.bf16.msra.mxu0 %v934_v22 }
  0x8d   : > { %861 = vmatprep.subr.bf16.mxu0 %v1043_v0 }
  0x90   : > { %862 = vmatpush3.bf16.msra.mxu0 %v935_v23 }
  0x91   : > { %863 = vmatprep.subr.bf16.mxu0 %v1043_v0 }
  0x94   : > { %864 = vmatpush3.bf16.msra.mxu0 %v936_v32 }
  0x95   : > { %865 = vmatprep.subr.bf16.mxu0 %v1043_v0 }
  0x98   : > { %866 = vmatpush3.bf16.msra.mxu0 %v937_v33 }
 0x14e   : > { %v425_v25 = vpop.f32.mrb[0].mxu0 }
 0x14f   : > { %v426_v26 = vadd.f32 %v755_v24, %v425_v25  ;;  %v829_v27 = vpop.f32.mrb[1].mxu0 }
 0x150   : > { %v428_v28 = vpop.f32.mrb[2].mxu0 }
 0x151   : > { %v431_v29 = vmax.f32 %v426_v26, 0.0  ;;  %v830_v30 = vpop.f32.mrb[3].mxu0 }
 0x153   : > { %v432_v31 = vpack.c.bf16 %v431_v29, %v431_v29 }
 0x155   : > { %848 = vmatmul.mubr.bf16.vlgmr.msra.gmra.mrb[0].mxu1 %v432_v31 }
 0x228   : > { %v538_v35 = vpop.f32.mrb[0].mxu1 }
 0x229   : > { %v539_v36 = vadd.f32 %v764_v34, %v538_v35  ;;  %v849_v37 = vpop.f32.mrb[1].mxu1 }
 0x22a   : > { %v541_v38 = vpop.f32.mrb[2].mxu1 }
 0x22b   : > { %v544_v39 = vmax.f32 %v539_v36, 0.0  ;;  %v850_v40 = vpop.f32.mrb[3].mxu1 }
 0x22d   : > { %v545_v41 = vpack.c.bf16 %v544_v39, %v544_v39 }
 0x22f   : > { %868 = vmatmul.mubr.bf16.vlgmr.msra.gmra.mrb[4].mxu0 %v545_v41 }
 0x302   : > { %v651_v43 = vpop.f32.mrb[4].mxu0 }
 0x303   : > { %v652_v44 = vadd.f32 %v773_v42, %v651_v43  ;;  %v869_v45 = vpop.f32.mrb[5].mxu0 }
 0x304   : > { %v654_v46 = vpop.f32.mrb[6].mxu0 }
 0x305   : > { %657 = vst [vmem:[%s317_s22] sm:$0xff] %v652_v44  ;;  %v870_v47 = vpop.f32.mrb[7].mxu0 }
 0x306 PF: > { %s19_s24 = sadd.s32 1, %s1036_s24  }
 0x307   : > { %p16_p9 = scmp.ge.s32.totalorder %s19_s24, 4  }
 0x309   :  { %18 = sbr.rel (!%p16_p9) target bundleno = 2 (0x2), region = 91 }
 0x310   :  { %677 = vsyncpa [#allocation3], 1 }
 0x311   :  { %679 = vsyncpa [#allocation3 + $0x1], 1 }
 0x312   :  { %680 = vsyncpa [#allocation5], 1 }

</bundles_post_ra>
